<compile_context>
chip_gen: v7x
topology: tpu7x:2x2x1
jax: 0.10.0
libtpu: 0.0.40
codegen_flags: <defaults>
</compile_context>

<pallas_src>
import functools

import numpy as np

import jax
import jax.numpy as jnp
from jax.experimental import pallas as pl
from jax.experimental.pallas import tpu as pltpu


# ---------------------------------------------------------------------------
# Trace-time helpers (tiny tensors only)
# ---------------------------------------------------------------------------
def fold_bn(bn, eps=1e-5):
    scale = bn["gamma"] / jnp.sqrt(bn["var"] + eps)
    shift = bn["beta"] - bn["mean"] * scale
    return scale, shift


def _round_up(x, m):
    return (x + m - 1) // m * m


def _const_spec(a):
    nd = len(a.shape)
    return pl.BlockSpec(tuple(a.shape), lambda n: (0,) * nd)


# ---------------------------------------------------------------------------
# Kernel 1: up_layer (coarse resolution) + squeeze x-part projection
# ---------------------------------------------------------------------------
def _up_kernel(x_ref, w_ref, c_ref, o_ref, *, C, Cs, W, HW, OUTW):
    x = x_ref[0].astype(jnp.bfloat16)                       # (2C, H*W)
    wall = w_ref[...]                                       # (C, 3C) bf16
    cst = c_ref[...]                                        # (C, 11) f32

    def col(j):
        return cst[:, j:j + 1]

    # 1x1 conv (2C -> C) + bias + ReLU: dense per-pixel matmul on the MXU.
    y = jnp.dot(wall[:, :2 * C], x, preferred_element_type=jnp.float32)
    y = jnp.maximum(y + col(0), 0.0)                        # (C, H*W)

    # depthwise ConvT(1,3), stride (2,2), pad (0,1) + BN1 + ReLU, folded:
    # even / odd W1 output columns, still at coarse W resolution.
    lane = jax.lax.broadcasted_iota(jnp.int32, (1, HW), 1)
    not_last_w = (lane % W) != (W - 1)
    # x[w+1] neighbour (single tiny coarse shift; the fine-resolution shifts in
    # the spark kernel use pltpu.roll).
    y_next = jnp.concatenate(
        [y[:, 1:], jnp.zeros((y.shape[0], 1), jnp.float32)], axis=1)
    y_next = jnp.where(not_last_w, y_next, 0.0)
    ae = jnp.maximum(y * col(1) + col(4), 0.0)                      # W1 even cols
    ao = jnp.maximum(y * col(3) + y_next * col(2) + col(4), 0.0)    # W1 odd cols

    # depthwise ConvT(3,1), stride (2,2), pad (1,0) + BN2 + ReLU, folded:
    # three data-carrying fine-row phases per column family (R%4 = 0, 1, 3).
    pieces = []
    for t in (ae, ao):
        pieces.append(jnp.maximum(t * col(5) + col(8), 0.0))    # fine row 4i
        pieces.append(jnp.maximum(t * col(6) + col(9), 0.0))    # fine row 4i+1
        pieces.append(jnp.maximum(t * col(7) + col(10), 0.0))   # fine row 4i-1
    d = jnp.concatenate(pieces, axis=1)                     # (C, 6*H*W)

    # squeeze-conv x-part (C -> Cs, BN folded) applied at coarse resolution.
    z = jnp.dot(wall[:Cs, 2 * C:], d.astype(jnp.bfloat16),
                preferred_element_type=jnp.float32)         # (Cs, 6*H*W)
    if OUTW > 6 * HW:
        z = jnp.concatenate(
            [z, jnp.zeros((Cs, OUTW - 6 * HW), jnp.float32)], axis=1)
    o_ref[0] = z.astype(jnp.bfloat16)


# ---------------------------------------------------------------------------
# Kernel 2: Spark_Module at bridge resolution (squeeze, expand_1x1, expand_kxk)
# ---------------------------------------------------------------------------
def _spark_kernel(u_ref, br_ref, w_ref, c_ref, o_ref, *, C, Cs, Wb, P):
    u = u_ref[0].astype(jnp.float32)                        # (Cs, P) projected up
    br = br_ref[0].astype(jnp.bfloat16)                     # (C, P) bridge
    wall = w_ref[...]                                       # (Cs, C+2Cs) bf16
    cst = c_ref[...]                                        # (Cs, 11) f32

    def col(j):
        return cst[:, j:j + 1]

    idx = jax.lax.broadcasted_iota(jnp.int32, (1, P), 1)
    colw = idx % Wb

    # squeeze 1x1 over cat([up, bridge]) + BN + ReLU; the up-channel half was
    # already projected at coarse resolution and arrives as `u`.
    xs = jnp.dot(wall[:, :C], br, preferred_element_type=jnp.float32)
    xs = jnp.maximum(xs + u + col(0), 0.0)                  # (Cs, P)
    xs_bf = xs.astype(jnp.bfloat16)

    # expand_kxk: depthwise (1,3) + bias + ReLU (lane rolls, W halo masked).
    prv = jnp.where(colw != 0, pltpu.roll(xs, shift=1, axis=1), 0.0)
    nxt = jnp.where(colw != Wb - 1, pltpu.roll(xs, shift=P - 1, axis=1), 0.0)
    e = jnp.maximum(prv * col(1) + xs * col(2) + nxt * col(3) + col(4), 0.0)

    # depthwise (3,1) + BN + ReLU (lane rolls by +-Wb, H halo masked).
    up = jnp.where(idx >= Wb, pltpu.roll(e, shift=Wb, axis=1), 0.0)
    dn = jnp.where(idx < P - Wb, pltpu.roll(e, shift=P - Wb, axis=1), 0.0)
    e = jnp.maximum(up * col(5) + e * col(6) + dn * col(7) + col(8), 0.0)

    # expand_1x1 (on xs) and expand_kxk final 1x1 (on e), BN + ReLU each; the
    # channel concat is realised as the output row concat.
    e1 = jnp.maximum(
        jnp.dot(wall[:, C:C + Cs], xs_bf, preferred_element_type=jnp.float32)
        + col(9), 0.0)
    ek = jnp.maximum(
        jnp.dot(wall[:, C + Cs:], e.astype(jnp.bfloat16),
                preferred_element_type=jnp.float32) + col(10), 0.0)
    o_ref[0] = jnp.concatenate([e1, ek], axis=0)


# ---------------------------------------------------------------------------
# Up_Block forward (NCHW in, NCHW out, no layout transposes)
# ---------------------------------------------------------------------------
def up_block_forward(params, x_nchw, bridge_nchw):
    x = x_nchw.astype(jnp.float32)
    br = bridge_nchw.astype(jnp.float32)
    N, C2, H, W = x.shape
    _, C, Hb, Wb = br.shape
    assert C2 == 2 * C and C % 2 == 0
    Cs = C // 2
    HW = H * W
    P = Hb * Wb
    H2, W2 = 4 * H - 3, 4 * W - 3            # up-path fine output extent
    up = params["up"]
    sp = params["spark"]

    # ---------------- up_layer constants (bias + BN folded) -------------------
    s1, sh1 = fold_bn(up["bn1"])
    s2, sh2 = fold_bn(up["bn2"])
    k0, k1, k2 = up["t13_w"][0], up["t13_w"][1], up["t13_w"][2]
    g0, g1, g2 = up["t31_w"][0], up["t31_w"][1], up["t31_w"][2]
    t1 = s1 * up["t13_b"] + sh1
    t2 = s2 * up["t31_b"] + sh2
    aodd = jnp.maximum(t1, 0.0)              # odd-H1-row constant of ConvT(1,3)
    u2 = aodd * g0 * s2 + t2
    v2 = aodd * g2 * s2 + t2
    cpack1 = jnp.stack(
        [up["pw_b"], k1 * s1, k0 * s1, k2 * s1, t1,
         g1 * s2, g2 * s2, g0 * s2, t2, u2, v2], axis=1)          # (C, 11)

    s_sq, sh_sq = fold_bn(sp["sq_bn"])
    wsq = sp["sq_w"].T * s_sq[:, None]       # (Cs, 2C) squeeze, BN folded
    wsq_x, wsq_br = wsq[:, :C], wsq[:, C:]
    wpack1 = jnp.concatenate(
        [up["pw_w"].T,
         jnp.concatenate([wsq_x, jnp.zeros((C - Cs, C), jnp.float32)], axis=0)],
        axis=1).astype(jnp.bfloat16)                              # (C, 3C)

    OUTW = _round_up(6 * HW, 128)            # lane-dense kernel-1 output width

    up_kernel = functools.partial(_up_kernel, C=C, Cs=Cs, W=W, HW=HW, OUTW=OUTW)
    z = pl.pallas_call(
        up_kernel,
        out_shape=jax.ShapeDtypeStruct((N, Cs, OUTW), jnp.bfloat16),
        grid=(N,),
        in_specs=[
            pl.BlockSpec((1, 2 * C, HW), lambda n: (n, 0, 0)),
            _const_spec(wpack1),
            _const_spec(cpack1),
        ],
        out_specs=pl.BlockSpec((1, Cs, OUTW), lambda n: (n, 0, 0)),
        compiler_params=pltpu.CompilerParams(dimension_semantics=("parallel",)),
    )(x.reshape(N, 2 * C, HW), wpack1, cpack1)

    # ---------------- coarse -> fine placement (pure relayout, XLA) -----------
    # Background: bias-only phases of the transposed convs (odd fine columns,
    # fine rows R % 4 == 2), projected through the squeeze x-half; zero in the
    # F.pad region.
    bodd = jnp.maximum(t2, 0.0)
    kmid = jnp.maximum(aodd * g1 * s2 + t2, 0.0)
    pb_odd = wsq_x @ bodd
    pb_mid = wsq_x @ kmid
    rr = np.arange(Hb)[:, None]
    cc = np.arange(Wb)[None, :]
    in_up = (rr < H2) & (cc < W2)
    m_odd = jnp.asarray((in_up & (cc % 2 == 1)).astype(np.float32))
    m_mid = jnp.asarray((in_up & (cc % 2 == 0) & (rr % 4 == 2)).astype(np.float32))
    bg = pb_odd[:, None, None] * m_odd[None] + pb_mid[:, None, None] * m_mid[None]
    U = jnp.broadcast_to(bg.astype(jnp.bfloat16)[None], (N, Cs, Hb, Wb))

    rl, cl = min(H2, Hb), min(W2, Wb)        # crop (negative F.pad) handled here

    def place(dst, k, r0, c0, si0):
        nr = len(range(r0, rl, 4))
        nc = len(range(c0, cl, 4))
        if nr <= 0 or nc <= 0:
            return dst
        src = z[:, :, k * HW:(k + 1) * HW].reshape(N, Cs, H, W)
        return dst.at[:, :, r0:rl:4, c0:cl:4].set(src[:, :, si0:si0 + nr, :nc])

    U = place(U, 0, 0, 0, 0)   # even W1 cols, fine rows R = 4i
    U = place(U, 1, 1, 0, 0)   # even W1 cols, fine rows R = 4i+1
    U = place(U, 2, 3, 0, 1)   # even W1 cols, fine rows R = 4i-1
    U = place(U, 3, 0, 2, 0)   # odd  W1 cols, fine rows R = 4i
    U = place(U, 4, 1, 2, 0)   # odd  W1 cols, fine rows R = 4i+1
    U = place(U, 5, 3, 2, 1)   # odd  W1 cols, fine rows R = 4i-1
    U = U.reshape(N, Cs, P)

    # ---------------- Spark (concat_layer) constants ---------------------------
    t_sq = s_sq * sp["sq_b"] + sh_sq
    s_e1, sh_e1 = fold_bn(sp["e1_bn"])
    we1 = sp["e1_w"].T * s_e1[:, None]
    te1 = s_e1 * sp["e1_b"] + sh_e1
    a0, a1, a2 = sp["dw13_w"][0], sp["dw13_w"][1], sp["dw13_w"][2]
    s31, sh31 = fold_bn(sp["dw31_bn"])
    c0_, c1_, c2_ = sp["dw31_w"][0], sp["dw31_w"][1], sp["dw31_w"][2]
    t31 = s31 * sp["dw31_b"] + sh31
    s_ek, sh_ek = fold_bn(sp["ek_pw_bn"])
    wek = sp["ek_pw_w"].T * s_ek[:, None]
    tek = s_ek * sp["ek_pw_b"] + sh_ek

    cpack2 = jnp.stack(
        [t_sq, a0, a1, a2, sp["dw13_b"],
         c0_ * s31, c1_ * s31, c2_ * s31, t31, te1, tek], axis=1)  # (Cs, 11)
    wpack2 = jnp.concatenate([wsq_br, we1, wek],
                             axis=1).astype(jnp.bfloat16)          # (Cs, C+2Cs)

    spark_kernel = functools.partial(_spark_kernel, C=C, Cs=Cs, Wb=Wb, P=P)
    out = pl.pallas_call(
        spark_kernel,
        out_shape=jax.ShapeDtypeStruct((N, 2 * Cs, P), jnp.float32),
        grid=(N,),
        in_specs=[
            pl.BlockSpec((1, Cs, P), lambda n: (n, 0, 0)),
            pl.BlockSpec((1, C, P), lambda n: (n, 0, 0)),
            _const_spec(wpack2),
            _const_spec(cpack2),
        ],
        out_specs=pl.BlockSpec((1, 2 * Cs, P), lambda n: (n, 0, 0)),
        compiler_params=pltpu.CompilerParams(dimension_semantics=("parallel",)),
    )(U, br.reshape(N, C, P), wpack2, cpack2)

    return out.reshape(N, 2 * Cs, Hb, Wb)    # NCHW, no transpose needed


# ---------------------------------------------------------------------------
# Deterministic parameter init (shapes from the module's __init__)
# ---------------------------------------------------------------------------
def init_bn(key, c):
    k1, k2, k3, k4 = jax.random.split(key, 4)
    return dict(
        gamma=jax.random.uniform(k1, (c,), jnp.float32, 0.5, 1.5),
        beta=jax.random.normal(k2, (c,), jnp.float32) * 0.1,
        mean=jax.random.normal(k3, (c,), jnp.float32) * 0.1,
        var=jax.random.uniform(k4, (c,), jnp.float32, 0.5, 1.5),
    )


def init_params(key, C):
    keys = iter(jax.random.split(key, 32))

    def nk():
        return next(keys)

    def w(shape, fan_in):
        return jax.random.normal(nk(), shape, jnp.float32) / jnp.sqrt(float(fan_in))

    Cin, Cs = 2 * C, C // 2
    up = dict(
        pw_w=w((Cin, C), Cin), pw_b=w((C,), Cin),
        t13_w=w((3, C), 3), t13_b=w((C,), 3), bn1=init_bn(nk(), C),
        t31_w=w((3, C), 3), t31_b=w((C,), 3), bn2=init_bn(nk(), C),
    )
    spark = dict(
        sq_w=w((Cin, Cs), Cin), sq_b=w((Cs,), Cin), sq_bn=init_bn(nk(), Cs),
        e1_w=w((Cs, Cs), Cs), e1_b=w((Cs,), Cs), e1_bn=init_bn(nk(), Cs),
        dw13_w=w((3, Cs), 3), dw13_b=w((Cs,), 3),
        dw31_w=w((3, Cs), 3), dw31_b=w((Cs,), 3), dw31_bn=init_bn(nk(), Cs),
        ek_pw_w=w((Cs, Cs), Cs), ek_pw_b=w((Cs,), Cs), ek_pw_bn=init_bn(nk(), Cs),
    )
    return dict(up=up, spark=spark)


if __name__ == "__main__":
    key = jax.random.PRNGKey(0)
    kx, kb, kp = jax.random.split(key, 3)
    C = 8
    # x: NCHW input to the up path (2C channels); bridge: NCHW skip (C channels)
    x = jax.random.normal(kx, (2, 2 * C, 4, 4), jnp.float32)
    bridge = jax.random.normal(kb, (2, C, 16, 16), jnp.float32)
    params = init_params(kp, C)

    fwd = jax.jit(functools.partial(up_block_forward, params))
    out = jax.block_until_ready(fwd(x, bridge))
    assert out.shape == (2, C, 16, 16), out.shape
    assert bool(jnp.all(jnp.isfinite(out)))
    print("KERNEL_OK")
</pallas_src>

<mosaic_0001>
module attributes {stable_mosaic.version = 11 : i64} {
  func.func @_up_kernel(%arg0: i32, %arg1: memref<1x16x16xf32, #tpu.memory_space<vmem>>, %arg2: memref<8x24xbf16, #tpu.memory_space<vmem>>, %arg3: memref<8x11xf32, #tpu.memory_space<vmem>>, %arg4: memref<1x4x128xbf16, #tpu.memory_space<vmem>>) attributes {dimension_semantics = [#tpu.dimension_semantics<parallel>], iteration_bounds = array<i64: 2>, scalar_prefetch = 0 : i64, scratch_operands = 0 : i64, tpu.core_type = #tpu.core_type<tc>, window_params = [{transform_indices = @transform_0, window_bounds = array<i64: 1, 16, 16>}, {pipeline_mode = #tpu.pipeline_mode<synchronous>, transform_indices = @transform_1, window_bounds = array<i64: 8, 24>}, {pipeline_mode = #tpu.pipeline_mode<synchronous>, transform_indices = @transform_2, window_bounds = array<i64: 8, 11>}, {transform_indices = @transform_3, window_bounds = array<i64: 1, 4, 128>}]} {
    %c0 = arith.constant 0 : index
    %c0_0 = arith.constant 0 : index
    %c0_1 = arith.constant 0 : index
    %0 = vector.load %arg1[%c0, %c0_0, %c0_1] : memref<1x16x16xf32, #tpu.memory_space<vmem>>, vector<1x16x16xf32>
    %1 = vector.shape_cast %0 : vector<1x16x16xf32> to vector<16x16xf32>
    %2 = arith.truncf %1 : vector<16x16xf32> to vector<16x16xbf16>
    %c0_2 = arith.constant 0 : index
    %c0_3 = arith.constant 0 : index
    %3 = vector.load %arg2[%c0_2, %c0_3] : memref<8x24xbf16, #tpu.memory_space<vmem>>, vector<8x24xbf16>
    %c0_4 = arith.constant 0 : index
    %c0_5 = arith.constant 0 : index
    %4 = vector.load %arg3[%c0_4, %c0_5] : memref<8x11xf32, #tpu.memory_space<vmem>>, vector<8x11xf32>
    %5 = vector.extract_strided_slice %3 {offsets = [0, 0], sizes = [8, 16], strides = [1, 1]} : vector<8x24xbf16> to vector<8x16xbf16>
    %cst = arith.constant dense<0.000000e+00> : vector<8x16xf32>
    %6 = tpu.matmul %5, %2, %cst {dimension_numbers = #tpu.dot_dimension_numbers<[1], [0], [0], [1], [0, 0, 1, 1], [], []>} : vector<8x16xbf16>, vector<16x16xbf16>, vector<8x16xf32> -> vector<8x16xf32>
    %7 = vector.extract_strided_slice %4 {offsets = [0, 0], sizes = [8, 1], strides = [1, 1]} : vector<8x11xf32> to vector<8x1xf32>
    %8 = vector.broadcast %7 : vector<8x1xf32> to vector<8x16xf32>
    %9 = arith.addf %6, %8 : vector<8x16xf32>
    %cst_6 = arith.constant 0.000000e+00 : f32
    %10 = vector.broadcast %cst_6 : f32 to vector<8x16xf32>
    %11 = arith.maximumf %9, %10 : vector<8x16xf32>
    %12 = tpu.iota {dimensions = array<i32: 1>} : vector<1x16xi32>
    %c4_i32 = arith.constant 4 : i32
    %c0_i32 = arith.constant 0 : i32
    %13 = arith.cmpi eq, %c4_i32, %c0_i32 : i32
    %c1_i32 = arith.constant 1 : i32
    %14 = arith.select %13, %c1_i32, %c4_i32 : i32
    %15 = vector.broadcast %14 : i32 to vector<1x16xi32>
    %16 = arith.remsi %12, %15 : vector<1x16xi32>
    %c0_i32_7 = arith.constant 0 : i32
    %17 = vector.broadcast %c0_i32_7 : i32 to vector<1x16xi32>
    %18 = arith.cmpi ne, %16, %17 : vector<1x16xi32>
    %c0_i32_8 = arith.constant 0 : i32
    %19 = vector.broadcast %c0_i32_8 : i32 to vector<1x16xi32>
    %20 = arith.cmpi slt, %16, %19 : vector<1x16xi32>
    %c0_i32_9 = arith.constant 0 : i32
    %21 = arith.cmpi slt, %14, %c0_i32_9 : i32
    %22 = vector.broadcast %21 : i1 to vector<1x16xi1>
    %23 = vector.broadcast %22 : vector<1x16xi1> to vector<1x16xi1>
    %24 = arith.xori %20, %23 : vector<1x16xi1>
    %25 = arith.andi %24, %18 : vector<1x16xi1>
    %26 = vector.broadcast %14 : i32 to vector<1x16xi32>
    %27 = arith.addi %16, %26 : vector<1x16xi32>
    %28 = arith.select %25, %27, %16 : vector<1x16xi1>, vector<1x16xi32>
    %c3_i32 = arith.constant 3 : i32
    %29 = vector.broadcast %c3_i32 : i32 to vector<1x16xi32>
    %30 = arith.cmpi ne, %28, %29 : vector<1x16xi32>
    %31 = vector.extract_strided_slice %11 {offsets = [0, 1], sizes = [8, 15], strides = [1, 1]} : vector<8x16xf32> to vector<8x15xf32>
    %cst_10 = arith.constant 0.000000e+00 : f32
    %32 = vector.broadcast %cst_10 : f32 to vector<8x1xf32>
    %33 = tpu.concatenate %31, %32 in 1 : vector<8x15xf32>, vector<8x1xf32> -> vector<8x16xf32>
    %cst_11 = arith.constant 0.000000e+00 : f32
    %34 = vector.shape_cast %30 : vector<1x16xi1> to vector<1x16xi1>
    %35 = vector.broadcast %34 : vector<1x16xi1> to vector<8x16xi1>
    %36 = vector.broadcast %cst_11 : f32 to vector<8x16xf32>
    %37 = arith.select %35, %33, %36 : vector<8x16xi1>, vector<8x16xf32>
    %38 = vector.extract_strided_slice %4 {offsets = [0, 1], sizes = [8, 1], strides = [1, 1]} : vector<8x11xf32> to vector<8x1xf32>
    %39 = vector.broadcast %38 : vector<8x1xf32> to vector<8x16xf32>
    %40 = arith.mulf %11, %39 : vector<8x16xf32>
    %41 = vector.extract_strided_slice %4 {offsets = [0, 4], sizes = [8, 1], strides = [1, 1]} : vector<8x11xf32> to vector<8x1xf32>
    %42 = vector.broadcast %41 : vector<8x1xf32> to vector<8x16xf32>
    %43 = arith.addf %40, %42 : vector<8x16xf32>
    %cst_12 = arith.constant 0.000000e+00 : f32
    %44 = vector.broadcast %cst_12 : f32 to vector<8x16xf32>
    %45 = arith.maximumf %43, %44 : vector<8x16xf32>
    %46 = vector.extract_strided_slice %4 {offsets = [0, 3], sizes = [8, 1], strides = [1, 1]} : vector<8x11xf32> to vector<8x1xf32>
    %47 = vector.broadcast %46 : vector<8x1xf32> to vector<8x16xf32>
    %48 = arith.mulf %11, %47 : vector<8x16xf32>
    %49 = vector.extract_strided_slice %4 {offsets = [0, 2], sizes = [8, 1], strides = [1, 1]} : vector<8x11xf32> to vector<8x1xf32>
    %50 = vector.broadcast %49 : vector<8x1xf32> to vector<8x16xf32>
    %51 = arith.mulf %37, %50 : vector<8x16xf32>
    %52 = arith.addf %48, %51 : vector<8x16xf32>
    %53 = vector.extract_strided_slice %4 {offsets = [0, 4], sizes = [8, 1], strides = [1, 1]} : vector<8x11xf32> to vector<8x1xf32>
    %54 = vector.broadcast %53 : vector<8x1xf32> to vector<8x16xf32>
    %55 = arith.addf %52, %54 : vector<8x16xf32>
    %cst_13 = arith.constant 0.000000e+00 : f32
    %56 = vector.broadcast %cst_13 : f32 to vector<8x16xf32>
    %57 = arith.maximumf %55, %56 : vector<8x16xf32>
    %58 = vector.extract_strided_slice %4 {offsets = [0, 5], sizes = [8, 1], strides = [1, 1]} : vector<8x11xf32> to vector<8x1xf32>
    %59 = vector.broadcast %58 : vector<8x1xf32> to vector<8x16xf32>
    %60 = arith.mulf %45, %59 : vector<8x16xf32>
    %61 = vector.extract_strided_slice %4 {offsets = [0, 8], sizes = [8, 1], strides = [1, 1]} : vector<8x11xf32> to vector<8x1xf32>
    %62 = vector.broadcast %61 : vector<8x1xf32> to vector<8x16xf32>
    %63 = arith.addf %60, %62 : vector<8x16xf32>
    %cst_14 = arith.constant 0.000000e+00 : f32
    %64 = vector.broadcast %cst_14 : f32 to vector<8x16xf32>
    %65 = arith.maximumf %63, %64 : vector<8x16xf32>
    %66 = vector.extract_strided_slice %4 {offsets = [0, 6], sizes = [8, 1], strides = [1, 1]} : vector<8x11xf32> to vector<8x1xf32>
    %67 = vector.broadcast %66 : vector<8x1xf32> to vector<8x16xf32>
    %68 = arith.mulf %45, %67 : vector<8x16xf32>
    %69 = vector.extract_strided_slice %4 {offsets = [0, 9], sizes = [8, 1], strides = [1, 1]} : vector<8x11xf32> to vector<8x1xf32>
    %70 = vector.broadcast %69 : vector<8x1xf32> to vector<8x16xf32>
    %71 = arith.addf %68, %70 : vector<8x16xf32>
    %cst_15 = arith.constant 0.000000e+00 : f32
    %72 = vector.broadcast %cst_15 : f32 to vector<8x16xf32>
    %73 = arith.maximumf %71, %72 : vector<8x16xf32>
    %74 = vector.extract_strided_slice %4 {offsets = [0, 7], sizes = [8, 1], strides = [1, 1]} : vector<8x11xf32> to vector<8x1xf32>
    %75 = vector.broadcast %74 : vector<8x1xf32> to vector<8x16xf32>
    %76 = arith.mulf %45, %75 : vector<8x16xf32>
    %77 = vector.extract_strided_slice %4 {offsets = [0, 10], sizes = [8, 1], strides = [1, 1]} : vector<8x11xf32> to vector<8x1xf32>
    %78 = vector.broadcast %77 : vector<8x1xf32> to vector<8x16xf32>
    %79 = arith.addf %76, %78 : vector<8x16xf32>
    %cst_16 = arith.constant 0.000000e+00 : f32
    %80 = vector.broadcast %cst_16 : f32 to vector<8x16xf32>
    %81 = arith.maximumf %79, %80 : vector<8x16xf32>
    %82 = vector.extract_strided_slice %4 {offsets = [0, 5], sizes = [8, 1], strides = [1, 1]} : vector<8x11xf32> to vector<8x1xf32>
    %83 = vector.broadcast %82 : vector<8x1xf32> to vector<8x16xf32>
    %84 = arith.mulf %57, %83 : vector<8x16xf32>
    %85 = vector.extract_strided_slice %4 {offsets = [0, 8], sizes = [8, 1], strides = [1, 1]} : vector<8x11xf32> to vector<8x1xf32>
    %86 = vector.broadcast %85 : vector<8x1xf32> to vector<8x16xf32>
    %87 = arith.addf %84, %86 : vector<8x16xf32>
    %cst_17 = arith.constant 0.000000e+00 : f32
    %88 = vector.broadcast %cst_17 : f32 to vector<8x16xf32>
    %89 = arith.maximumf %87, %88 : vector<8x16xf32>
    %90 = vector.extract_strided_slice %4 {offsets = [0, 6], sizes = [8, 1], strides = [1, 1]} : vector<8x11xf32> to vector<8x1xf32>
    %91 = vector.broadcast %90 : vector<8x1xf32> to vector<8x16xf32>
    %92 = arith.mulf %57, %91 : vector<8x16xf32>
    %93 = vector.extract_strided_slice %4 {offsets = [0, 9], sizes = [8, 1], strides = [1, 1]} : vector<8x11xf32> to vector<8x1xf32>
    %94 = vector.broadcast %93 : vector<8x1xf32> to vector<8x16xf32>
    %95 = arith.addf %92, %94 : vector<8x16xf32>
    %cst_18 = arith.constant 0.000000e+00 : f32
    %96 = vector.broadcast %cst_18 : f32 to vector<8x16xf32>
    %97 = arith.maximumf %95, %96 : vector<8x16xf32>
    %98 = vector.extract_strided_slice %4 {offsets = [0, 7], sizes = [8, 1], strides = [1, 1]} : vector<8x11xf32> to vector<8x1xf32>
    %99 = vector.broadcast %98 : vector<8x1xf32> to vector<8x16xf32>
    %100 = arith.mulf %57, %99 : vector<8x16xf32>
    %101 = vector.extract_strided_slice %4 {offsets = [0, 10], sizes = [8, 1], strides = [1, 1]} : vector<8x11xf32> to vector<8x1xf32>
    %102 = vector.broadcast %101 : vector<8x1xf32> to vector<8x16xf32>
    %103 = arith.addf %100, %102 : vector<8x16xf32>
    %cst_19 = arith.constant 0.000000e+00 : f32
    %104 = vector.broadcast %cst_19 : f32 to vector<8x16xf32>
    %105 = arith.maximumf %103, %104 : vector<8x16xf32>
    %106 = tpu.concatenate %65, %73, %81, %89, %97, %105 in 1 : vector<8x16xf32>, vector<8x16xf32>, vector<8x16xf32>, vector<8x16xf32>, vector<8x16xf32>, vector<8x16xf32> -> vector<8x96xf32>
    %107 = vector.extract_strided_slice %3 {offsets = [0, 16], sizes = [4, 8], strides = [1, 1]} : vector<8x24xbf16> to vector<4x8xbf16>
    %108 = arith.truncf %106 : vector<8x96xf32> to vector<8x96xbf16>
    %cst_20 = arith.constant dense<0.000000e+00> : vector<4x96xf32>
    %109 = tpu.matmul %107, %108, %cst_20 {dimension_numbers = #tpu.dot_dimension_numbers<[1], [0], [0], [1], [0, 0, 1, 1], [], []>} : vector<4x8xbf16>, vector<8x96xbf16>, vector<4x96xf32> -> vector<4x96xf32>
    %cst_21 = arith.constant 0.000000e+00 : f32
    %110 = vector.broadcast %cst_21 : f32 to vector<4x32xf32>
    %111 = tpu.concatenate %109, %110 in 1 : vector<4x96xf32>, vector<4x32xf32> -> vector<4x128xf32>
    %112 = arith.truncf %111 : vector<4x128xf32> to vector<4x128xbf16>
    %c0_22 = arith.constant 0 : index
    %c0_23 = arith.constant 0 : index
    %c0_24 = arith.constant 0 : index
    %113 = vector.load %arg4[%c0_22, %c0_23, %c0_24] : memref<1x4x128xbf16, #tpu.memory_space<vmem>>, vector<1x4x128xbf16>
    %114 = vector.shape_cast %113 : vector<1x4x128xbf16> to vector<4x128xbf16>
    %115 = vector.shape_cast %112 : vector<4x128xbf16> to vector<1x4x128xbf16>
    tpu.vector_store %arg4[%c0_22, %c0_23, %c0_24], %115 {strides = array<i32>} : memref<1x4x128xbf16, #tpu.memory_space<vmem>>, vector<1x4x128xbf16>,
    return
  }
  func.func @transform_0(%arg0: i32) -> (i32, i32, i32) {
    %c0_i32 = arith.constant 0 : i32
    %c0_i32_0 = arith.constant 0 : i32
    %c0_i32_1 = arith.constant 0 : i32
    return %arg0, %c0_i32, %c0_i32_0 : i32, i32, i32
  }
  func.func @transform_1(%arg0: i32) -> (i32, i32) {
    %c0_i32 = arith.constant 0 : i32
    %c0_i32_0 = arith.constant 0 : i32
    %c0_i32_1 = arith.constant 0 : i32
    return %c0_i32, %c0_i32_0 : i32, i32
  }
  func.func @transform_2(%arg0: i32) -> (i32, i32) {
    %c0_i32 = arith.constant 0 : i32
    %c0_i32_0 = arith.constant 0 : i32
    %c0_i32_1 = arith.constant 0 : i32
    return %c0_i32, %c0_i32_0 : i32, i32
  }
  func.func @transform_3(%arg0: i32) -> (i32, i32, i32) {
    %c0_i32 = arith.constant 0 : i32
    %c0_i32_0 = arith.constant 0 : i32
    %c0_i32_1 = arith.constant 0 : i32
    return %arg0, %c0_i32, %c0_i32_0 : i32, i32, i32
  }
}

module attributes {stable_mosaic.version = 11 : i64} {
  func.func @_spark_kernel(%arg0: i32, %arg1: memref<1x4x256xbf16, #tpu.memory_space<vmem>>, %arg2: memref<1x8x256xf32, #tpu.memory_space<vmem>>, %arg3: memref<4x16xbf16, #tpu.memory_space<vmem>>, %arg4: memref<4x11xf32, #tpu.memory_space<vmem>>, %arg5: memref<1x8x256xf32, #tpu.memory_space<vmem>>) attributes {dimension_semantics = [#tpu.dimension_semantics<parallel>], iteration_bounds = array<i64: 2>, scalar_prefetch = 0 : i64, scratch_operands = 0 : i64, tpu.core_type = #tpu.core_type<tc>, window_params = [{transform_indices = @transform_0, window_bounds = array<i64: 1, 4, 256>}, {transform_indices = @transform_1, window_bounds = array<i64: 1, 8, 256>}, {pipeline_mode = #tpu.pipeline_mode<synchronous>, transform_indices = @transform_2, window_bounds = array<i64: 4, 16>}, {pipeline_mode = #tpu.pipeline_mode<synchronous>, transform_indices = @transform_3, window_bounds = array<i64: 4, 11>}, {transform_indices = @transform_4, window_bounds = array<i64: 1, 8, 256>}]} {
    %c0 = arith.constant 0 : index
    %c0_0 = arith.constant 0 : index
    %c0_1 = arith.constant 0 : index
    %0 = vector.load %arg1[%c0, %c0_0, %c0_1] : memref<1x4x256xbf16, #tpu.memory_space<vmem>>, vector<1x4x256xbf16>
    %1 = vector.shape_cast %0 : vector<1x4x256xbf16> to vector<4x256xbf16>
    %2 = arith.extf %1 : vector<4x256xbf16> to vector<4x256xf32>
    %c0_2 = arith.constant 0 : index
    %c0_3 = arith.constant 0 : index
    %c0_4 = arith.constant 0 : index
    %3 = vector.load %arg2[%c0_2, %c0_3, %c0_4] : memref<1x8x256xf32, #tpu.memory_space<vmem>>, vector<1x8x256xf32>
    %4 = vector.shape_cast %3 : vector<1x8x256xf32> to vector<8x256xf32>
    %5 = arith.truncf %4 : vector<8x256xf32> to vector<8x256xbf16>
    %c0_5 = arith.constant 0 : index
    %c0_6 = arith.constant 0 : index
    %6 = vector.load %arg3[%c0_5, %c0_6] : memref<4x16xbf16, #tpu.memory_space<vmem>>, vector<4x16xbf16>
    %c0_7 = arith.constant 0 : index
    %c0_8 = arith.constant 0 : index
    %7 = vector.load %arg4[%c0_7, %c0_8] : memref<4x11xf32, #tpu.memory_space<vmem>>, vector<4x11xf32>
    %8 = tpu.iota {dimensions = array<i32: 1>} : vector<1x256xi32>
    %c16_i32 = arith.constant 16 : i32
    %c0_i32 = arith.constant 0 : i32
    %9 = arith.cmpi eq, %c16_i32, %c0_i32 : i32
    %c1_i32 = arith.constant 1 : i32
    %10 = arith.select %9, %c1_i32, %c16_i32 : i32
    %11 = vector.broadcast %10 : i32 to vector<1x256xi32>
    %12 = arith.remsi %8, %11 : vector<1x256xi32>
    %c0_i32_9 = arith.constant 0 : i32
    %13 = vector.broadcast %c0_i32_9 : i32 to vector<1x256xi32>
    %14 = arith.cmpi ne, %12, %13 : vector<1x256xi32>
    %c0_i32_10 = arith.constant 0 : i32
    %15 = vector.broadcast %c0_i32_10 : i32 to vector<1x256xi32>
    %16 = arith.cmpi slt, %12, %15 : vector<1x256xi32>
    %c0_i32_11 = arith.constant 0 : i32
    %17 = arith.cmpi slt, %10, %c0_i32_11 : i32
    %18 = vector.broadcast %17 : i1 to vector<1x256xi1>
    %19 = vector.broadcast %18 : vector<1x256xi1> to vector<1x256xi1>
    %20 = arith.xori %16, %19 : vector<1x256xi1>
    %21 = arith.andi %20, %14 : vector<1x256xi1>
    %22 = vector.broadcast %10 : i32 to vector<1x256xi32>
    %23 = arith.addi %12, %22 : vector<1x256xi32>
    %24 = arith.select %21, %23, %12 : vector<1x256xi1>, vector<1x256xi32>
    %25 = vector.extract_strided_slice %6 {offsets = [0, 0], sizes = [4, 8], strides = [1, 1]} : vector<4x16xbf16> to vector<4x8xbf16>
    %cst = arith.constant dense<0.000000e+00> : vector<4x256xf32>
    %26 = tpu.matmul %25, %5, %cst {dimension_numbers = #tpu.dot_dimension_numbers<[1], [0], [0], [1], [0, 0, 1, 1], [], []>} : vector<4x8xbf16>, vector<8x256xbf16>, vector<4x256xf32> -> vector<4x256xf32>
    %27 = arith.addf %26, %2 : vector<4x256xf32>
    %28 = vector.extract_strided_slice %7 {offsets = [0, 0], sizes = [4, 1], strides = [1, 1]} : vector<4x11xf32> to vector<4x1xf32>
    %29 = vector.broadcast %28 : vector<4x1xf32> to vector<4x256xf32>
    %30 = arith.addf %27, %29 : vector<4x256xf32>
    %cst_12 = arith.constant 0.000000e+00 : f32
    %31 = vector.broadcast %cst_12 : f32 to vector<4x256xf32>
    %32 = arith.maximumf %30, %31 : vector<4x256xf32>
    %33 = arith.truncf %32 : vector<4x256xf32> to vector<4x256xbf16>
    %c0_i32_13 = arith.constant 0 : i32
    %34 = vector.broadcast %c0_i32_13 : i32 to vector<1x256xi32>
    %35 = arith.cmpi ne, %24, %34 : vector<1x256xi32>
    %c1_i32_14 = arith.constant 1 : i32
    %36 = tpu.dynamic_rotate %32 by %c1_i32_14 dim 1 : vector<4x256xf32>, i32 -> vector<4x256xf32>
    %cst_15 = arith.constant 0.000000e+00 : f32
    %37 = vector.shape_cast %35 : vector<1x256xi1> to vector<1x256xi1>
    %38 = vector.broadcast %37 : vector<1x256xi1> to vector<4x256xi1>
    %39 = vector.broadcast %cst_15 : f32 to vector<4x256xf32>
    %40 = arith.select %38, %36, %39 : vector<4x256xi1>, vector<4x256xf32>
    %c15_i32 = arith.constant 15 : i32
    %41 = vector.broadcast %c15_i32 : i32 to vector<1x256xi32>
    %42 = arith.cmpi ne, %24, %41 : vector<1x256xi32>
    %c255_i32 = arith.constant 255 : i32
    %43 = tpu.dynamic_rotate %32 by %c255_i32 dim 1 : vector<4x256xf32>, i32 -> vector<4x256xf32>
    %cst_16 = arith.constant 0.000000e+00 : f32
    %44 = vector.shape_cast %42 : vector<1x256xi1> to vector<1x256xi1>
    %45 = vector.broadcast %44 : vector<1x256xi1> to vector<4x256xi1>
    %46 = vector.broadcast %cst_16 : f32 to vector<4x256xf32>
    %47 = arith.select %45, %43, %46 : vector<4x256xi1>, vector<4x256xf32>
    %48 = vector.extract_strided_slice %7 {offsets = [0, 1], sizes = [4, 1], strides = [1, 1]} : vector<4x11xf32> to vector<4x1xf32>
    %49 = vector.broadcast %48 : vector<4x1xf32> to vector<4x256xf32>
    %50 = arith.mulf %40, %49 : vector<4x256xf32>
    %51 = vector.extract_strided_slice %7 {offsets = [0, 2], sizes = [4, 1], strides = [1, 1]} : vector<4x11xf32> to vector<4x1xf32>
    %52 = vector.broadcast %51 : vector<4x1xf32> to vector<4x256xf32>
    %53 = arith.mulf %32, %52 : vector<4x256xf32>
    %54 = arith.addf %50, %53 : vector<4x256xf32>
    %55 = vector.extract_strided_slice %7 {offsets = [0, 3], sizes = [4, 1], strides = [1, 1]} : vector<4x11xf32> to vector<4x1xf32>
    %56 = vector.broadcast %55 : vector<4x1xf32> to vector<4x256xf32>
    %57 = arith.mulf %47, %56 : vector<4x256xf32>
    %58 = arith.addf %54, %57 : vector<4x256xf32>
    %59 = vector.extract_strided_slice %7 {offsets = [0, 4], sizes = [4, 1], strides = [1, 1]} : vector<4x11xf32> to vector<4x1xf32>
    %60 = vector.broadcast %59 : vector<4x1xf32> to vector<4x256xf32>
    %61 = arith.addf %58, %60 : vector<4x256xf32>
    %cst_17 = arith.constant 0.000000e+00 : f32
    %62 = vector.broadcast %cst_17 : f32 to vector<4x256xf32>
    %63 = arith.maximumf %61, %62 : vector<4x256xf32>
    %c16_i32_18 = arith.constant 16 : i32
    %64 = vector.broadcast %c16_i32_18 : i32 to vector<1x256xi32>
    %65 = arith.cmpi sge, %8, %64 : vector<1x256xi32>
    %c16_i32_19 = arith.constant 16 : i32
    %66 = tpu.dynamic_rotate %63 by %c16_i32_19 dim 1 : vector<4x256xf32>, i32 -> vector<4x256xf32>
    %cst_20 = arith.constant 0.000000e+00 : f32
    %67 = vector.shape_cast %65 : vector<1x256xi1> to vector<1x256xi1>
    %68 = vector.broadcast %67 : vector<1x256xi1> to vector<4x256xi1>
    %69 = vector.broadcast %cst_20 : f32 to vector<4x256xf32>
    %70 = arith.select %68, %66, %69 : vector<4x256xi1>, vector<4x256xf32>
    %c240_i32 = arith.constant 240 : i32
    %71 = vector.broadcast %c240_i32 : i32 to vector<1x256xi32>
    %72 = arith.cmpi slt, %8, %71 : vector<1x256xi32>
    %c240_i32_21 = arith.constant 240 : i32
    %73 = tpu.dynamic_rotate %63 by %c240_i32_21 dim 1 : vector<4x256xf32>, i32 -> vector<4x256xf32>
    %cst_22 = arith.constant 0.000000e+00 : f32
    %74 = vector.shape_cast %72 : vector<1x256xi1> to vector<1x256xi1>
    %75 = vector.broadcast %74 : vector<1x256xi1> to vector<4x256xi1>
    %76 = vector.broadcast %cst_22 : f32 to vector<4x256xf32>
    %77 = arith.select %75, %73, %76 : vector<4x256xi1>, vector<4x256xf32>
    %78 = vector.extract_strided_slice %7 {offsets = [0, 5], sizes = [4, 1], strides = [1, 1]} : vector<4x11xf32> to vector<4x1xf32>
    %79 = vector.broadcast %78 : vector<4x1xf32> to vector<4x256xf32>
    %80 = arith.mulf %70, %79 : vector<4x256xf32>
    %81 = vector.extract_strided_slice %7 {offsets = [0, 6], sizes = [4, 1], strides = [1, 1]} : vector<4x11xf32> to vector<4x1xf32>
    %82 = vector.broadcast %81 : vector<4x1xf32> to vector<4x256xf32>
    %83 = arith.mulf %63, %82 : vector<4x256xf32>
    %84 = arith.addf %80, %83 : vector<4x256xf32>
    %85 = vector.extract_strided_slice %7 {offsets = [0, 7], sizes = [4, 1], strides = [1, 1]} : vector<4x11xf32> to vector<4x1xf32>
    %86 = vector.broadcast %85 : vector<4x1xf32> to vector<4x256xf32>
    %87 = arith.mulf %77, %86 : vector<4x256xf32>
    %88 = arith.addf %84, %87 : vector<4x256xf32>
    %89 = vector.extract_strided_slice %7 {offsets = [0, 8], sizes = [4, 1], strides = [1, 1]} : vector<4x11xf32> to vector<4x1xf32>
    %90 = vector.broadcast %89 : vector<4x1xf32> to vector<4x256xf32>
    %91 = arith.addf %88, %90 : vector<4x256xf32>
    %cst_23 = arith.constant 0.000000e+00 : f32
    %92 = vector.broadcast %cst_23 : f32 to vector<4x256xf32>
    %93 = arith.maximumf %91, %92 : vector<4x256xf32>
    %94 = vector.extract_strided_slice %6 {offsets = [0, 8], sizes = [4, 4], strides = [1, 1]} : vector<4x16xbf16> to vector<4x4xbf16>
    %cst_24 = arith.constant dense<0.000000e+00> : vector<4x256xf32>
    %95 = tpu.matmul %94, %33, %cst_24 {dimension_numbers = #tpu.dot_dimension_numbers<[1], [0], [0], [1], [0, 0, 1, 1], [], []>} : vector<4x4xbf16>, vector<4x256xbf16>, vector<4x256xf32> -> vector<4x256xf32>
    %96 = vector.extract_strided_slice %7 {offsets = [0, 9], sizes = [4, 1], strides = [1, 1]} : vector<4x11xf32> to vector<4x1xf32>
    %97 = vector.broadcast %96 : vector<4x1xf32> to vector<4x256xf32>
    %98 = arith.addf %95, %97 : vector<4x256xf32>
    %cst_25 = arith.constant 0.000000e+00 : f32
    %99 = vector.broadcast %cst_25 : f32 to vector<4x256xf32>
    %100 = arith.maximumf %98, %99 : vector<4x256xf32>
    %101 = vector.extract_strided_slice %6 {offsets = [0, 12], sizes = [4, 4], strides = [1, 1]} : vector<4x16xbf16> to vector<4x4xbf16>
    %102 = arith.truncf %93 : vector<4x256xf32> to vector<4x256xbf16>
    %cst_26 = arith.constant dense<0.000000e+00> : vector<4x256xf32>
    %103 = tpu.matmul %101, %102, %cst_26 {dimension_numbers = #tpu.dot_dimension_numbers<[1], [0], [0], [1], [0, 0, 1, 1], [], []>} : vector<4x4xbf16>, vector<4x256xbf16>, vector<4x256xf32> -> vector<4x256xf32>
    %104 = vector.extract_strided_slice %7 {offsets = [0, 10], sizes = [4, 1], strides = [1, 1]} : vector<4x11xf32> to vector<4x1xf32>
    %105 = vector.broadcast %104 : vector<4x1xf32> to vector<4x256xf32>
    %106 = arith.addf %103, %105 : vector<4x256xf32>
    %cst_27 = arith.constant 0.000000e+00 : f32
    %107 = vector.broadcast %cst_27 : f32 to vector<4x256xf32>
    %108 = arith.maximumf %106, %107 : vector<4x256xf32>
    %109 = tpu.concatenate %100, %108 in 0 : vector<4x256xf32>, vector<4x256xf32> -> vector<8x256xf32>
    %c0_28 = arith.constant 0 : index
    %c0_29 = arith.constant 0 : index
    %c0_30 = arith.constant 0 : index
    %110 = vector.load %arg5[%c0_28, %c0_29, %c0_30] : memref<1x8x256xf32, #tpu.memory_space<vmem>>, vector<1x8x256xf32>
    %111 = vector.shape_cast %110 : vector<1x8x256xf32> to vector<8x256xf32>
    %112 = vector.shape_cast %109 : vector<8x256xf32> to vector<1x8x256xf32>
    tpu.vector_store %arg5[%c0_28, %c0_29, %c0_30], %112 {strides = array<i32>} : memref<1x8x256xf32, #tpu.memory_space<vmem>>, vector<1x8x256xf32>,
    return
  }
  func.func @transform_0(%arg0: i32) -> (i32, i32, i32) {
    %c0_i32 = arith.constant 0 : i32
    %c0_i32_0 = arith.constant 0 : i32
    %c0_i32_1 = arith.constant 0 : i32
    return %arg0, %c0_i32, %c0_i32_0 : i32, i32, i32
  }
  func.func @transform_1(%arg0: i32) -> (i32, i32, i32) {
    %c0_i32 = arith.constant 0 : i32
    %c0_i32_0 = arith.constant 0 : i32
    %c0_i32_1 = arith.constant 0 : i32
    return %arg0, %c0_i32, %c0_i32_0 : i32, i32, i32
  }
  func.func @transform_2(%arg0: i32) -> (i32, i32) {
    %c0_i32 = arith.constant 0 : i32
    %c0_i32_0 = arith.constant 0 : i32
    %c0_i32_1 = arith.constant 0 : i32
    return %c0_i32, %c0_i32_0 : i32, i32
  }
  func.func @transform_3(%arg0: i32) -> (i32, i32) {
    %c0_i32 = arith.constant 0 : i32
    %c0_i32_0 = arith.constant 0 : i32
    %c0_i32_1 = arith.constant 0 : i32
    return %c0_i32, %c0_i32_0 : i32, i32
  }
  func.func @transform_4(%arg0: i32) -> (i32, i32, i32) {
    %c0_i32 = arith.constant 0 : i32
    %c0_i32_0 = arith.constant 0 : i32
    %c0_i32_1 = arith.constant 0 : i32
    return %arg0, %c0_i32, %c0_i32_0 : i32, i32, i32
  }
}

</mosaic_0001>

<bundles_post_ra>
// kernel: up_block_forward.2
= control target key start
LH: loop header
LB: loop body
LE: loop exit
PB: predicated region body
PF: predicated region fallthrough
CT: control target
= control target key end

     0   :  { %s573_s12 = smov 0   ;;  %s607_s0 = inlined_call_operand.vmem [shape: f32[2,16,16], index: 0, kind: input, shape index: {}]   ;;  %s608_s1 = inlined_call_operand.vmem [shape: bf16[8,24], index: 1, kind: input, shape index: {}]   ;;  %s609_s2 = inlined_call_operand.vmem [shape: f32[8,11], index: 2, kind: input, shape index: {}]   ;;  %s610_s3 = inlined_call_operand.vmem [shape: bf16[2,4,128], index: 3, kind: output, shape index: {}]  }
   0x1 LB: > { %s455_s13 = sadd.s32 4294967295, %s531_s12   ;;  %p459_p0 = scmp.ge.s32.totalorder %s531_s12, 1  ;;  %s531_s12 = sphi %s573_s12, %s13_s12  }
   0x2   : > { %p137_p1 = scmp.lt.s32.totalorder %s531_s12, 3 }
   0x4   : > { %p138_p2 = pnand %p459_p0, %p137_p1 }
   0x5   : > { %p160_p3 = scmp.lt.s32.totalorder (!%p138_p2), %s455_s13, 1  ;;  %v533_v0 = vmov (!%p138_p2), 0.0   ;;  %vm534_vm0 = vmmov (!%p138_p2), 0   ;;  %v174_v1 = vld [vmem:[%s609_s2] sm:$0xff] (!%p138_p2)  ;;  %v535_v2 = vmov (!%p138_p2), 3   ;;  %v536_v3 = vmov (!%p138_p2), 0  }
   0x6   : > { %141 = sbr.rel (%p138_p2) target bundleno = 717 (0x2cd), region = 32  ;;  %473 = vmatprep.subr.bf16.mxu0 (!%p138_p2), %v533_v0  ;;  %475 = vmatprep.mubr.msk.bf16.mxu0 (!%p138_p2), %vm534_vm0, %v533_v0  ;;  %v537_v7 = vmov (!%p138_p2), 2   ;;  %v538_v8 = vmov (!%p138_p2), 1   ;;  %v593_v9 = vld [vmem:[%s608_s1] sm:$0xf] (!%p138_p2)  ;;  %vm180_vm1 = vcmask (!%p138_p2), 130048   ;;  %v225_v37 = vlaneseq (!%p138_p2) }
   0x7   : > { %515 = vset.pattern.permute.xlu1 (!%p138_p2), %v535_v2  ;;  %479 = vmatprep.subr.bf16.mxu1 (!%p138_p2), %v533_v0  ;;  %v539_v10 = vmov (!%p138_p2), 4   ;;  %v540_v11 = vmov (!%p138_p2), 7   ;;  %v541_v12 = vmov (!%p138_p2), 6   ;;  %v542_v13 = vmov (!%p138_p2), 5   ;;  %s546_s22 = smov (!%p138_p2), 127   ;;  %s547_s23 = smov (!%p138_p2), 16  }
   0x8   : > { %261 = vperm.xlu1 (!%p138_p2), %515, %v174_v1   ;;  %513 = vset.pattern.permute.xlu0 (!%p138_p2), %v536_v3  ;;  %v543_v14 = vmov (!%p138_p2), 9   ;;  %v544_v15 = vmov (!%p138_p2), 8   ;;  %v545_v16 = vmov (!%p138_p2), 10   ;;  %v226_v38 = vand.u32 (!%p138_p2), 127, %v225_v37  ;;  %s548_s24 = smov (!%p138_p2), 48   ;;  %s549_s25 = smov (!%p138_p2), 32  }
   0x9   : > { %177 = vperm.xlu0 (!%p138_p2), %513, %v174_v1   ;;  %481 = vmatprep.mubr.msk.bf16.mxu1 (!%p138_p2), %vm534_vm0, %v533_v0  ;;  %vm244_vm2 = vcmask (!%p138_p2), 121856   ;;  %s550_s26 = smov (!%p138_p2), 80   ;;  %s551_s27 = smov (!%p138_p2), 64   ;;  %v464_v63 = vcombine.low (!%p138_p2), %v593_v9, %v593_v9  ;;  %vm336_vm4 = vcmask (!%p138_p2), 261120   ;;  %vm338_vm5 = vcmask (!%p138_p2), 392192  }
   0xa   : > { %v231_v39 = vand.u32 (!%p138_p2), 3, %v226_v38  ;;  %s552_s28 = smov (!%p138_p2), 112   ;;  %vm340_vm6 = vcmask (!%p138_p2), 523264   ;;  %vm342_vm7 = vcmask (!%p138_p2), 654336   ;;  %vm354_vm8 = vcmask (!%p138_p2), 1043456  }
   0xb   : > { %vm350_vm9 = vcmask (!%p138_p2), 64512   ;;  %vm398_vm10 = vcmask (!%p138_p2), 785408  }
   0xc   : > { %516 = vset.pattern.permute.xlu1 (!%p138_p2), %v537_v7  ;;  %vm239_vm3 = vcmp.ne.s32.totalorder (!%p138_p2), %v231_v39, 3 }
   0xd   : > { %s612_s13 = smov (!%p160_p3, %s455_s13), 1  ;;  %266 = vperm.xlu1 %516, %v174_v1   ;;  %514 = vset.pattern.permute.xlu0 %v538_v8 }
   0xe   : > { %s468_s16 = sshll.u32 %s612_s13, 4  ;;  %250 = vperm.xlu0 %514, %v174_v1   ;;  %s462_s29 = sshll.u32 %s612_s13, 1 }
   0xf   : > { %s164_s19 = scalar_lea.vmem %s607_s0, %s468_s16  ;;  %s168_s5 = scalar_lea.vmem %s610_s3, %s462_s29 }
  0x10   : > { %v170_v4 = vld [vmem:[%s164_s19] sm:$0xff]  ;;  %v171_v5 = vld [vmem:[%s164_s19 + $0x8] sm:$0xff] }
  0x11   : > { %v172_v6 = vpack.c.bf16 %v171_v5, %v170_v4  ;;  %517 = vset.pattern.permute.xlu1 %v539_v10 }
  0x12   : > { %255 = vperm.xlu1 %517, %v174_v1   ;;  %519 = vset.pattern.permute.xlu0 %v540_v11 }
  0x13   : > { %474 = vmatpush3.bf16.msra.mxu0 %v172_v6  ;;  %296 = vperm.xlu0 %519, %v174_v1  }
  0x16   : > { %476 = vmatmul.mubr.msk.bf16.vlgmr.msra.gmra.mrb[0].mxu0 %vm180_vm1, %v593_v9  ;;  %518 = vset.pattern.permute.xlu1 %v541_v12 }
  0x17   : > { %285 = vperm.xlu1 %518, %v174_v1   ;;  %522 = vset.pattern.permute.xlu0 %v545_v16 }
  0x1b   : > { %520 = vset.pattern.permute.xlu1 %v542_v13 }
  0x1c   : > { %274 = vperm.xlu1 %520, %v174_v1  }
  0x20   : > { %521 = vset.pattern.permute.xlu1 %v543_v14 }
  0x21   : > { %290 = vperm.xlu1 %521, %v174_v1  }
  0x25   : > { %523 = vset.pattern.permute.xlu1 %v544_v15 }
  0x26   : > { %279 = vperm.xlu1 %523, %v174_v1  }
  0x87   : > { %v262_v17 = vpop.permute.xlu1 %261 }
  0x88   : > { %v178_v20 = vpop.permute.xlu0 %177 }
  0x8c   : > { %v267_v18 = vpop.permute.xlu1 %266 }
  0x8d   : > { %v251_v26 = vpop.permute.xlu0 %250 }
  0x91   : > { %v256_v19 = vpop.permute.xlu1 %255 }
  0x92   : > { %v297_v40 = vpop.permute.xlu0 %296 }
  0x96   : > { %v286_v21 = vpop.permute.xlu1 %285 }
  0x9b   : > { %v275_v30 = vpop.permute.xlu1 %274 }
  0xa0   : > { %v291_v34 = vpop.permute.xlu1 %290 }
  0xa5   : > { %v280_v50 = vpop.permute.xlu1 %279 }
  0xe9   : > { %v218_v22 = vpop.f32.mrb[0].mxu0 }
  0xea   : > { %v219_v23 = vadd.f32 %v218_v22, %v178_v20  ;;  %v477_v24 = vpop.f32.mrb[1].mxu0 }
  0xeb   : > { %v221_v25 = vpop.f32.mrb[2].mxu0 }
  0xec   : > { %v224_v27 = vmax.f32 %v219_v23, 0.0  ;;  %v478_v28 = vpop.f32.mrb[3].mxu0 }
  0xee   : > { %v253_v29 = vmul.f32 %v251_v26, %v224_v27  ;;  %241 = vrot.lane.b32.xlu0 %v224_v27, %s546_s22  ;;  %v264_v44 = vmul.f32 %v262_v17, %v224_v27 }
  0xf0   : > { %v258_v31 = vadd.f32 %v256_v19, %v253_v29 }
  0xf2   : > { %v259_v32 = vmax.f32 %v258_v31, 0.0  ;;  %301 = vperm.xlu0 %522, %v174_v1  }
  0xf4   : > { %v288_v33 = vmul.f32 %v286_v21, %v259_v32  ;;  %v299_v53 = vmul.f32 %v297_v40, %v259_v32  ;;  %v277_v0 = vmul.f32 %v275_v30, %v259_v32 }
  0xf6   : > { %v293_v35 = vadd.f32 %v291_v34, %v288_v33  ;;  %v282_v1 = vadd.f32 %v280_v50, %v277_v0 }
  0xf8   : > { %v294_v36 = vmax.f32 %v293_v35, 0.0  ;;  %v283_v3 = vmax.f32 %v282_v1, 0.0 }
  0xfa   : > { %316 = vrot.lane.b32.xlu1 %v294_v36, %s547_s23 }
 0x160   : > { %v242_v41 = vpop.permute.xlu0 %241 }
 0x161   : > { %v245_v42 = vsel %vm244_vm2, %v242_v41, 0.0 }
 0x162   : > { %v248_v43 = vsel %vm239_vm3, %v245_v42, 0.0 }
 0x163   : > { %v269_v45 = vmul.f32 %v267_v18, %v248_v43 }
 0x165   : > { %v270_v46 = vadd.f32 %v269_v45, %v264_v44 }
 0x167   : > { %v271_v47 = vadd.f32 %v270_v46, %v256_v19 }
 0x169   : > { %v272_v48 = vmax.f32 %v271_v47, 0.0 }
 0x16b   : > { %v306_v49 = vmul.f32 %v275_v30, %v272_v48  ;;  %v312_v54 = vmul.f32 %v297_v40, %v272_v48  ;;  %v309_v55 = vmul.f32 %v286_v21, %v272_v48 }
 0x16c   : > { %v317_v2 = vpop.permute.xlu1 %316 }
 0x16d   : > { %v307_v51 = vadd.f32 %v306_v49, %v280_v50  ;;  %v310_v61 = vadd.f32 %v309_v55, %v291_v34  ;;  %v335_v5 = vsel %vm180_vm1, %v283_v3, %v317_v2 }
 0x16f   : > { %v308_v52 = vmax.f32 %v307_v51, 0.0  ;;  %v311_v62 = vmax.f32 %v310_v61, 0.0 }
 0x171   : > { %v302_v56 = vpop.permute.xlu0 %301  ;;  %324 = vrot.lane.b32.xlu1 %v308_v52, %s548_s24 }
 0x172   : > { %v304_v57 = vadd.f32 %v302_v56, %v299_v53  ;;  %v313_v58 = vadd.f32 %v312_v54, %v302_v56 }
 0x174   : > { %v305_v59 = vmax.f32 %v304_v57, 0.0  ;;  %v314_v60 = vmax.f32 %v313_v58, 0.0 }
 0x176   : > { %320 = vrot.lane.b32.xlu0 %v305_v59, %s549_s25  ;;  %332 = vrot.lane.b32.xlu1 %v314_v60, %s550_s26 }
 0x17a   : > { %328 = vrot.lane.b32.xlu0 %v311_v62, %s551_s27 }
 0x17e   : > { %348 = vrot.lane.b32.xlu0 %v464_v63, %s552_s28 }
 0x1e3   : > { %v325_v4 = vpop.permute.xlu1 %324 }
 0x1e8   : > { %v321_v6 = vpop.permute.xlu0 %320  ;;  %v333_v11 = vpop.permute.xlu1 %332 }
 0x1e9   : > { %v337_v7 = vsel %vm336_vm4, %v335_v5, %v321_v6 }
 0x1ea   : > { %v339_v10 = vsel %vm338_vm5, %v337_v7, %v325_v4 }
 0x1ec   : > { %v329_v8 = vpop.permute.xlu0 %328 }
 0x1ed   : > { %v341_v9 = vsel %vm340_vm6, %v339_v10, %v329_v8 }
 0x1ee   : > { %v343_v12 = vsel %vm342_vm7, %v341_v9, %v333_v11 }
 0x1ef   : > { %v344_v13 = vpack.c.bf16 %v343_v12, %v343_v12 }
 0x1f0   : > { %v349_v15 = vpop.permute.xlu0 %348 }
 0x1f1   : > { %v356_v14 = vsel %vm354_vm8, %v344_v13, 0 }
 0x1f2   : > { %480 = vmatpush3.bf16.msra.mxu1 %v356_v14 }
 0x1f5   : > { %482 = vmatmul.mubr.msk.bf16.vlgmr.msra.gmra.mrb[0].mxu1 %vm350_vm9, %v349_v15 }
 0x2c8   : > { %v392_v16 = vpop.f32.mrb[0].mxu1 }
 0x2c9   : > { %v399_v17 = vsel %vm398_vm10, %v392_v16, 0.0  ;;  %v483_v18 = vpop.f32.mrb[1].mxu1 }
 0x2ca   : > { %v400_v19 = vpack.c.bf16 %v399_v17, %v399_v17  ;;  %v395_v20 = vpop.f32.mrb[2].mxu1 }
 0x2cb   : > { %v484_v21 = vpop.f32.mrb[3].mxu1 }
 0x2cc   : > { %401 = vst [vmem:[%s168_s5] sm:$0x3] %v400_v19 }
 0x2cd PF: > { %s13_s12 = sadd.s32 1, %s531_s12  }
 0x2ce   : > { %p10_p4 = scmp.ge.s32.totalorder %s13_s12, 4  }
 0x2d0   :  { %12 = sbr.rel (!%p10_p4) target bundleno = 1 (0x1), region = 62 }

// kernel: up_block_forward.3
= control target key start
LH: loop header
LB: loop body
LE: loop exit
PB: predicated region body
PF: predicated region fallthrough
CT: control target
= control target key end

     0   :  { %s755_s15 = smov 0   ;;  %s835_s0 = inlined_call_operand.vmem [shape: bf16[2,4,256], index: 0, kind: input, shape index: {}]   ;;  %s836_s1 = inlined_call_operand.vmem [shape: f32[2,8,256], index: 1, kind: input, shape index: {}]   ;;  %s837_s2 = inlined_call_operand.vmem [shape: bf16[4,16], index: 2, kind: input, shape index: {}]   ;;  %s838_s3 = inlined_call_operand.vmem [shape: f32[4,11], index: 3, kind: input, shape index: {}]   ;;  %s839_s4 = inlined_call_operand.vmem [shape: f32[2,8,256], index: 4, kind: output, shape index: {}]  }
   0x1 LB: > { %s645_s16 = sadd.s32 4294967295, %s710_s15   ;;  %p649_p0 = scmp.ge.s32.totalorder %s710_s15, 1  ;;  %s710_s15 = sphi %s755_s15, %s14_s15  }
   0x2   : > { %p172_p1 = scmp.lt.s32.totalorder %s710_s15, 3 }
   0x4   : > { %p173_p2 = pnand %p649_p0, %p172_p1 }
   0x5   : > { %p203_p3 = scmp.lt.s32.totalorder (!%p173_p2), %s645_s16, 1  ;;  %v712_v0 = vmov (!%p173_p2), 0   ;;  %v766_v1 = vld [vmem:[%s838_s3] sm:$0xf] (!%p173_p2)  ;;  %v713_v2 = vmov (!%p173_p2), 2   ;;  %vm261_vm0 = vcmask (!%p173_p2), 1043456   ;;  %v227_v34 = vlaneseq (!%p173_p2) }
   0x6   : > { %176 = sbr.rel (%p173_p2) target bundleno = 734 (0x2de), region = 36  ;;  %300 = vmatprep.mubr.bf16.mxu0 (!%p173_p2), %v712_v0  ;;  %693 = vset.pattern.permute.xlu0 (!%p173_p2), %v712_v0  ;;  %v714_v5 = vmov (!%p173_p2), 1   ;;  %v715_v8 = vmov (!%p173_p2), 3   ;;  %v785_v10 = vld [vmem:[%s837_s2] sm:$0x3] (!%p173_p2)  ;;  %vm257_vm1 = vcmask (!%p173_p2), 64512  }
   0x7   : > { %311 = vperm.xlu0 (!%p173_p2), %693, %v766_v1   ;;  %695 = vset.pattern.permute.xlu1 (!%p173_p2), %v713_v2  ;;  %v716_v11 = vmov (!%p173_p2), 4   ;;  %v717_v12 = vmov (!%p173_p2), 6   ;;  %v718_v13 = vmov (!%p173_p2), 5   ;;  %vm458_vm2 = vcmask (!%p173_p2), 1041408   ;;  %s719_s29 = smov (!%p173_p2), 1   ;;  %s720_s30 = smov (!%p173_p2), 127  }
   0x8   : > { %357 = vperm.xlu1 (!%p173_p2), %695, %v766_v1   ;;  %497 = vmatprep.mubr.bf16.mxu1 (!%p173_p2), %v712_v0  ;;  %v721_v31 = vmov (!%p173_p2), 7   ;;  %v722_v32 = vmov (!%p173_p2), 8   ;;  %v798_v36 = vand.u32 (!%p173_p2), 127, %v227_v34  ;;  %v723_v59 = vmov (!%p173_p2), 1983009808   ;;  %s724_s5 = smov (!%p173_p2), 16  }
   0x9   : > { %v446_v60 = vunpack.c.l.s4 (!%p173_p2), %v723_v59  ;;  %s725_s6 = smov (!%p173_p2), 112   ;;  %s726_s7 = smov (!%p173_p2), 116   ;;  %vm454_vm13 = vcmask (!%p173_p2), 31744  }
   0xa   : > { %v801_v37 = vadd.s32 (!%p173_p2), 128, %v798_v36  ;;  %v234_v40 = vand.u32 (!%p173_p2), 15, %v798_v36  ;;  %vm326_vm3 = vcmp.lt.s32.totalorder (!%p173_p2), %v798_v36, 1  ;;  %vm341_vm7 = vcmp.lt.s32.totalorder (!%p173_p2), %v798_v36, 127  ;;  %s727_s8 = smov (!%p173_p2), 120  }
   0xb   : > { %694 = vset.pattern.permute.xlu0 (!%p173_p2), %v714_v5  ;;  %vm386_vm9 = vcmp.lt.s32.totalorder (!%p173_p2), %v798_v36, 16  ;;  %vm380_vm10 = vcmp.ge.s32.totalorder (!%p173_p2), %v798_v36, 16  ;;  %vm401_vm11 = vcmp.lt.s32.totalorder (!%p173_p2), %v798_v36, 112 }
   0xc   : > { %696 = vset.pattern.permute.xlu1 (!%p173_p2), %v715_v8  ;;  %351 = vperm.xlu0 (!%p173_p2), %694, %v766_v1   ;;  %v241_v41 = vand.u32 (!%p173_p2), 15, %v801_v37  ;;  %vm320_vm4 = vcmp.ne.s32.totalorder (!%p173_p2), %v234_v40, 0  ;;  %vm806_vm6 = vcmp.ne.s32.totalorder (!%p173_p2), %v234_v40, 15  ;;  %vm396_vm12 = vcmp.lt.s32.totalorder (!%p173_p2), %v801_v37, 240 }
   0xd   : > { %s843_s16 = smov (!%p203_p3, %s645_s16), 1  ;;  %365 = vperm.xlu1 %696, %v766_v1  }
   0xe   : > { %s665_s19 = sshll.u32 %s843_s16, 4  ;;  %s664_s25 = sshll.u32 %s843_s16, 2  ;;  %vm321_vm5 = vcmp.ne.s32.totalorder %v241_v41, 0  ;;  %vm336_vm8 = vcmp.ne.s32.totalorder %v241_v41, 15 }
   0xf   : > { %s212_s22 = scalar_lea.vmem %s836_s1, %s665_s19  ;;  %s207_s28 = scalar_lea.vmem %s835_s0, %s664_s25 }
  0x10   : > { %v222_v3 = vld [vmem:[%s212_s22 + $0x8] sm:$0xff]  ;;  %v221_v4 = vld [vmem:[%s212_s22] sm:$0xff]  ;;  %698 = vset.pattern.permute.xlu0 %v718_v13  ;;  %v728_v13 = vmov 10   ;;  %s217_s11 = scalar_lea.vmem %s839_s4, %s665_s19 }
  0x11   : > { %v224_v6 = vpack.c.bf16 %v222_v3, %v222_v3  ;;  %v223_v7 = vpack.c.bf16 %v221_v4, %v221_v4  ;;  %697 = vset.pattern.permute.xlu1 %v716_v11  ;;  %v219_v14 = vld [vmem:[%s207_s28] sm:$0xf] }
  0x12   : > { %373 = vperm.xlu1 %697, %v766_v1   ;;  %v220_v15 = vunpack.c.l.bf16 %v219_v14  ;;  %v729_v14 = vmov 9  }
  0x13   : > { %656 = vmatprep.subr.msk.bf16.mxu0 %vm261_vm0, %v224_v6  ;;  %v263_v9 = vsel %vm261_vm0, %v223_v7, 0  ;;  %v447_v6 = vunpack.c.0.s8 %v446_v60  ;;  %v449_v7 = vshrl.u32 %v227_v34, 7 }
  0x14   : > { %269 = vmatpush1.bf16.msra.mxu0 %v263_v9  ;;  %v255_v16 = vcombine.high %v220_v15, %v220_v15 }
  0x15   : > { %v450_v11 = vsub.s32 %v447_v6, %v449_v7 }
  0x16   : > { %699 = vset.pattern.permute.xlu1 %v717_v12 }
  0x17   : > { %657 = vmatmul.mubr.msk.bf16.vlgmr.msra.gmra.mrb[0].mxu0 %vm257_vm1, %v785_v10  ;;  %v451_v12 = vrot.slane %v785_v10, %v450_v11 }
  0x18   : > { %557 = vmatprep.mubr.bf16.mxu0 %v712_v0 }
  0x86   : > { %v312_v18 = vpop.permute.xlu0 %311 }
  0x87   : > { %v358_v33 = vpop.permute.xlu1 %357 }
  0x8b   : > { %v352_v39 = vpop.permute.xlu0 %351 }
  0x8c   : > { %v366_v35 = vpop.permute.xlu1 %365 }
  0x91   : > { %v374_v38 = vpop.permute.xlu1 %373 }
  0xea   : > { %v302_v17 = vpop.f32.mrb[0].mxu0 }
  0xeb   : > { %v303_v19 = vadd.f32 %v302_v17, %v220_v15  ;;  %v304_v20 = vpop.f32.mrb[1].mxu0 }
  0xec   : > { %v305_v21 = vadd.f32 %v304_v20, %v255_v16  ;;  %v306_v22 = vpop.f32.mrb[2].mxu0 }
  0xed   : > { %v314_v23 = vadd.f32 %v312_v18, %v303_v19  ;;  %v307_v24 = vpop.f32.mrb[3].mxu0 }
  0xee   : > { %v315_v25 = vadd.f32 %v312_v18, %v305_v21 }
  0xef   : > { %v316_v26 = vmax.f32 %v314_v23, 0.0 }
  0xf0   : > { %v317_v27 = vmax.f32 %v315_v25, 0.0 }
  0xf1   : > { %322 = vrot.lane.b32.xlu1 %v316_v26, %s719_s29  ;;  %v318_v28 = vpack.c.bf16 %v316_v26, %v316_v26  ;;  %v360_v53 = vmul.f32 %v358_v33, %v316_v26 }
  0xf2   : > { %324 = vrot.lane.b32.xlu0 %v317_v27, %s719_s29  ;;  %v319_v29 = vpack.c.bf16 %v317_v27, %v317_v27  ;;  %v361_v54 = vmul.f32 %v358_v33, %v317_v27 }
  0xf3   : > { %v460_v30 = vsel %vm458_vm2, %v318_v28, 0 }
  0xf4   : > { %658 = vmatprep.subr.msk.bf16.mxu1 %vm458_vm2, %v319_v29 }
  0xf5   : > { %339 = vrot.lane.b32.xlu1 %v317_v27, %s720_s30  ;;  %466 = vmatpush1.bf16.msra.mxu1 %v460_v30 }
  0xf6   : > { %337 = vrot.lane.b32.xlu0 %v316_v26, %s720_s30 }
  0xf9   : > { %417 = vperm.xlu1 %699, %v766_v1  }
  0xfa   : > { %411 = vperm.xlu0 %698, %v766_v1  }
  0xfd   : > { %700 = vset.pattern.permute.xlu1 %v721_v31 }
  0xfe   : > { %425 = vperm.xlu1 %700, %v766_v1   ;;  %701 = vset.pattern.permute.xlu0 %v722_v32 }
 0x102   : > { %703 = vset.pattern.permute.xlu1 %v729_v14 }
 0x163   : > { %v323_v42 = vpop.permute.xlu1 %322 }
 0x164   : > { %v325_v43 = vpop.permute.xlu0 %324 }
 0x165   : > { %v327_v44 = vsel %vm326_vm3, %v323_v42, %v325_v43  ;;  %v328_v45 = vsel %vm326_vm3, %v325_v43, %v323_v42 }
 0x166   : > { %v333_v46 = vsel %vm320_vm4, %v328_v45, 0.0  ;;  %v334_v47 = vsel %vm321_vm5, %v327_v44, 0.0 }
 0x167   : > { %v354_v49 = vmul.f32 %v352_v39, %v333_v46  ;;  %v355_v50 = vmul.f32 %v352_v39, %v334_v47  ;;  %v340_v51 = vpop.permute.xlu1 %339 }
 0x168   : > { %v338_v52 = vpop.permute.xlu0 %337 }
 0x169   : > { %v342_v55 = vsel %vm341_vm7, %v338_v52, %v340_v51  ;;  %v343_v56 = vsel %vm341_vm7, %v340_v51, %v338_v52  ;;  %v362_v61 = vadd.f32 %v360_v53, %v354_v49  ;;  %v363_v62 = vadd.f32 %v361_v54, %v355_v50 }
 0x16a   : > { %v348_v57 = vsel %vm806_vm6, %v342_v55, 0.0  ;;  %v349_v58 = vsel %vm336_vm8, %v343_v56, 0.0 }
 0x16b   : > { %v368_v63 = vmul.f32 %v366_v35, %v348_v57  ;;  %v369_v0 = vmul.f32 %v366_v35, %v349_v58 }
 0x16d   : > { %v370_v2 = vadd.f32 %v368_v63, %v362_v61  ;;  %v371_v3 = vadd.f32 %v369_v0, %v363_v62 }
 0x16f   : > { %v376_v4 = vadd.f32 %v374_v38, %v370_v2  ;;  %v377_v5 = vadd.f32 %v374_v38, %v371_v3 }
 0x171   : > { %v378_v8 = vmax.f32 %v376_v4, 0.0  ;;  %v379_v9 = vmax.f32 %v377_v5, 0.0 }
 0x173   : > { %382 = vrot.lane.b32.xlu0 %v378_v8, %s724_s5  ;;  %384 = vrot.lane.b32.xlu1 %v379_v9, %s724_s5 }
 0x177   : > { %433 = vperm.xlu0 %701, %v766_v1   ;;  %397 = vrot.lane.b32.xlu1 %v378_v8, %s725_s6 }
 0x178   : > { %v418_v15 = vpop.permute.xlu1 %417 }
 0x179   : > { %v412_v17 = vpop.permute.xlu0 %411  ;;  %v420_v28 = vmul.f32 %v418_v15, %v378_v8  ;;  %v421_v29 = vmul.f32 %v418_v15, %v379_v9 }
 0x17b   : > { %399 = vrot.lane.b32.xlu1 %v379_v9, %s725_s6  ;;  %514 = vrot.lane.b32.xlu0 %v451_v12, %s726_s7 }
 0x17c   : > { %702 = vset.pattern.permute.xlu0 %v728_v13 }
 0x17d   : > { %v426_v16 = vpop.permute.xlu1 %425 }
 0x17f   : > { %452 = vrot.lane.b32.xlu1 %v451_v12, %s727_s8  ;;  %511 = vperm.xlu0 %702, %v766_v1  }
 0x183   : > { %441 = vperm.xlu1 %703, %v766_v1  }
 0x1e5   : > { %v385_v18 = vpop.permute.xlu1 %384  ;;  %v383_v19 = vpop.permute.xlu0 %382 }
 0x1e6   : > { %v388_v10 = vsel %vm386_vm9, %v385_v18, %v383_v19  ;;  %v387_v21 = vsel %vm386_vm9, %v383_v19, %v385_v18 }
 0x1e7   : > { %v393_v22 = vsel %vm380_vm10, %v388_v10, 0.0  ;;  %v415_v26 = vmul.f32 %v412_v17, %v387_v21 }
 0x1e8   : > { %v414_v25 = vmul.f32 %v412_v17, %v393_v22 }
 0x1e9   : > { %v398_v20 = vpop.permute.xlu1 %397  ;;  %v423_v33 = vadd.f32 %v421_v29, %v415_v26 }
 0x1ea   : > { %v422_v34 = vadd.f32 %v420_v28, %v414_v25 }
 0x1ed   : > { %v400_v23 = vpop.permute.xlu1 %399 }
 0x1ee   : > { %v402_v24 = vsel %vm401_vm11, %v398_v20, %v400_v23  ;;  %v403_v1 = vsel %vm401_vm11, %v400_v23, %v398_v20 }
 0x1ef   : > { %v409_v27 = vsel %vm396_vm12, %v403_v1, 0.0  ;;  %v428_v30 = vmul.f32 %v426_v16, %v402_v24 }
 0x1f0   : > { %v429_v31 = vmul.f32 %v426_v16, %v409_v27 }
 0x1f1   : > { %v453_v32 = vpop.permute.xlu1 %452  ;;  %v430_v35 = vadd.f32 %v428_v30, %v422_v34 }
 0x1f2   : > { %659 = vmatmul.mubr.msk.bf16.vlgmr.msra.gmra.mrb[0].mxu1 %vm454_vm13, %v453_v32  ;;  %v431_v36 = vadd.f32 %v429_v31, %v423_v33 }
 0x1f6   : > { %v434_v38 = vpop.permute.xlu0 %433 }
 0x1f7   : > { %v436_v37 = vadd.f32 %v434_v38, %v430_v35  ;;  %v437_v39 = vadd.f32 %v434_v38, %v431_v36 }
 0x1f9   : > { %v438_v40 = vmax.f32 %v436_v37, 0.0  ;;  %v439_v41 = vmax.f32 %v437_v39, 0.0 }
 0x1fa   : > { %v515_v45 = vpop.permute.xlu0 %514 }
 0x1fb   : > { %v508_v42 = vpack.c.bf16 %v438_v40, %v438_v40  ;;  %v509_v43 = vpack.c.bf16 %v439_v41, %v439_v41 }
 0x1fd   : > { %660 = vmatprep.subr.msk.bf16.mxu0 %vm458_vm2, %v509_v43  ;;  %v520_v44 = vsel %vm458_vm2, %v508_v42, 0 }
 0x1fe   : > { %526 = vmatpush1.bf16.msra.mxu0 %v520_v44  ;;  %v512_v51 = vpop.permute.xlu0 %511 }
 0x201   : > { %661 = vmatmul.mubr.msk.bf16.vlgmr.msra.gmra.mrb[4].mxu0 %vm454_vm13, %v515_v45 }
 0x202   : > { %v442_v50 = vpop.permute.xlu1 %441 }
 0x2c5   : > { %v499_v46 = vpop.f32.mrb[0].mxu1 }
 0x2c6   : > { %v501_v47 = vpop.f32.mrb[1].mxu1  ;;  %v500_v52 = vadd.f32 %v499_v46, %v442_v50 }
 0x2c7   : > { %v503_v48 = vpop.f32.mrb[2].mxu1  ;;  %v502_v54 = vadd.f32 %v501_v47, %v442_v50 }
 0x2c8   : > { %v504_v49 = vpop.f32.mrb[3].mxu1  ;;  %v506_v61 = vmax.f32 %v500_v52, 0.0 }
 0x2c9   : > { %v507_v63 = vmax.f32 %v502_v54, 0.0 }
 0x2d4   : > { %v559_v53 = vpop.f32.mrb[4].mxu0 }
 0x2d5   : > { %v561_v55 = vpop.f32.mrb[5].mxu0  ;;  %v560_v56 = vadd.f32 %v559_v53, %v512_v51 }
 0x2d6   : > { %v563_v57 = vpop.f32.mrb[6].mxu0  ;;  %v562_v58 = vadd.f32 %v561_v55, %v512_v51 }
 0x2d7   : > { %v566_v59 = vmax.f32 %v560_v56, 0.0  ;;  %v564_v60 = vpop.f32.mrb[7].mxu0 }
 0x2d8   : > { %v567_v62 = vmax.f32 %v562_v58, 0.0 }
 0x2d9   : > { %v570_v0 = vrot.slane %v566_v59, 4 }
 0x2da   : > { %v571_v2 = vrot.slane %v567_v62, 4 }
 0x2db   : > { %v574_v3 = vsel %vm261_vm0, %v506_v61, %v570_v0 }
 0x2dc   : > { %v575_v4 = vsel %vm261_vm0, %v507_v63, %v571_v2  ;;  %576 = vst [vmem:[%s217_s11] sm:$0xff] %v574_v3 }
 0x2dd   : > { %577 = vst [vmem:[%s217_s11 + $0x8] sm:$0xff] %v575_v4 }
 0x2de PF: > { %s14_s15 = sadd.s32 1, %s710_s15  }
 0x2df   : > { %p11_p4 = scmp.ge.s32.totalorder %s14_s15, 4  }
 0x2e1   :  { %13 = sbr.rel (!%p11_p4) target bundleno = 1 (0x1), region = 69 }

</bundles_post_ra>
